<compile_context>
chip_gen: v7x
topology: tpu7x:2x2x1
jax: 0.10.0
libtpu: 0.0.40
codegen_flags: <defaults>
</compile_context>

<pallas_src>
import functools

import jax
import jax.numpy as jnp
from jax.experimental import pallas as pl
from jax.experimental.pallas import tpu as pltpu


LANE = 128                            # pad feature dims to lane multiples
NODE_TILE = 512                       # row tile for large graphs
VMEM_LIMIT = 32 * 1024 * 1024         # scoped-VMEM budget safe on v5e/v6e/v7x
Y_RESIDENT_MAX_BYTES = 4 * 1024 * 1024  # keep resident Y (x2 buffers) modest


def _round_up(x, m):
    return ((x + m - 1) // m) * m


def _node_tiling(n):
    """(n_pad, row tile, reduction tile); always >= 2 row tiles (v7x megacore)."""
    n_pad = _round_up(n, LANE)
    if n_pad <= NODE_TILE:
        tm = max(64, n_pad // 2)          # >= 2 row tiles even for tiny graphs
        return n_pad, tm, n_pad
    n_pad = _round_up(n, NODE_TILE)
    tk = 1024 if n_pad % 1024 == 0 else NODE_TILE
    return n_pad, NODE_TILE, tk


def _reduction_tile(dim_pad, pref=512):
    for t in (pref, 256, 128):
        if dim_pad >= t and dim_pad % t == 0:
            return t
    return dim_pad


# ----------------------------------------------------------------------------
# Kernel 1 (prep): read padded f32 A once; write quantized A with self-loops
# baked on the diagonal (real rows only) and dinv = rsqrt(rowsum(A + I)).
# ----------------------------------------------------------------------------
def _prep_kernel(adj_ref, a_ref, dinv_ref, acc_ref, *, n_real):
    i = pl.program_id(0)
    k = pl.program_id(1)

    @pl.when(k == 0)
    def _():
        acc_ref[...] = jnp.zeros_like(acc_ref)

    a = adj_ref[...]
    tm, tk = a.shape
    row = jax.lax.broadcasted_iota(jnp.int32, (tm, tk), 0) + i * tm
    col = jax.lax.broadcasted_iota(jnp.int32, (tm, tk), 1) + k * tk
    # Bake the self loop for real rows only (keeps padded rows inert).
    a = jnp.where((row == col) & (row < n_real), 1.0, a)

    acc_ref[...] += jnp.sum(a, axis=1, keepdims=True)
    a_ref[...] = a.astype(a_ref.dtype)

    @pl.when(k == pl.num_programs(1) - 1)
    def _():
        # Real rows have degree >= 1 (self loop); padded rows guarded to 1.
        dinv_ref[...] = jax.lax.rsqrt(jnp.maximum(acc_ref[...], 1.0))


def prep_adjacency(adj_pad, *, n_real, tm, tk, store_dtype=jnp.int8):
    n_pad = adj_pad.shape[0]
    kernel = functools.partial(_prep_kernel, n_real=n_real)
    itemsize = jnp.dtype(store_dtype).itemsize
    return pl.pallas_call(
        kernel,
        out_shape=(jax.ShapeDtypeStruct((n_pad, n_pad), store_dtype),
                   jax.ShapeDtypeStruct((n_pad, 1), jnp.float32)),
        grid_spec=pltpu.PrefetchScalarGridSpec(
            num_scalar_prefetch=0,
            grid=(n_pad // tm, n_pad // tk),
            in_specs=[pl.BlockSpec((tm, tk), lambda i, k: (i, k))],
            out_specs=[pl.BlockSpec((tm, tk), lambda i, k: (i, k)),
                       pl.BlockSpec((tm, 1), lambda i, k: (i, 0))],
            scratch_shapes=[pltpu.VMEM((tm, 1), jnp.float32)],
        ),
        compiler_params=pltpu.CompilerParams(
            dimension_semantics=("parallel", "arbitrary"),
            vmem_limit_bytes=VMEM_LIMIT,
        ),
        cost_estimate=pl.CostEstimate(
            flops=n_pad * n_pad,
            transcendentals=n_pad,
            bytes_accessed=n_pad * n_pad * (4 + itemsize) + n_pad * 4,
        ),
    )(adj_pad)


# ----------------------------------------------------------------------------
# Kernel 2 (first layer only): Y0 = dinv * (X @ W0), f32 accumulate, bf16 store.
# f_in reduction is tiled so large feature dims stay within VMEM.
# ----------------------------------------------------------------------------
def _xw_kernel(x_ref, w_ref, dinv_ref, y_ref, acc_ref):
    k = pl.program_id(1)

    @pl.when(k == 0)
    def _():
        acc_ref[...] = jnp.zeros_like(acc_ref)

    acc_ref[...] += jnp.dot(x_ref[...], w_ref[...],
                            preferred_element_type=jnp.float32)

    @pl.when(k == pl.num_programs(1) - 1)
    def _():
        y_ref[...] = (dinv_ref[...] * acc_ref[...]).astype(y_ref.dtype)


def transform_features(x, w, dinv, *, tm):
    n, f_in = x.shape
    f_out = w.shape[1]
    tkf = _reduction_tile(f_in)
    return pl.pallas_call(
        _xw_kernel,
        out_shape=jax.ShapeDtypeStruct((n, f_out), jnp.bfloat16),
        grid_spec=pltpu.PrefetchScalarGridSpec(
            num_scalar_prefetch=0,
            grid=(n // tm, f_in // tkf),
            in_specs=[
                pl.BlockSpec((tm, tkf), lambda i, k: (i, k)),
                pl.BlockSpec((tkf, f_out), lambda i, k: (k, 0)),
                pl.BlockSpec((tm, 1), lambda i, k: (i, 0)),
            ],
            out_specs=pl.BlockSpec((tm, f_out), lambda i, k: (i, 0)),
            scratch_shapes=[pltpu.VMEM((tm, f_out), jnp.float32)],
        ),
        compiler_params=pltpu.CompilerParams(
            dimension_semantics=("parallel", "arbitrary"),
            vmem_limit_bytes=VMEM_LIMIT,
        ),
        cost_estimate=pl.CostEstimate(
            flops=2 * n * f_in * f_out,
            transcendentals=0,
            bytes_accessed=n * f_in * 4 + (n // tm) * f_in * f_out * 4
                           + n * f_out * 2 + n * 4,
        ),
    )(x, w, dinv)


# ----------------------------------------------------------------------------
# Kernel 3 (aggregation): acc = (A + I) @ Y  with int8 A upcast to bf16 at the
# MXU, f32 accumulator.  Finalize either
#   * fused:  Y_next = dinv * (relu(dinv*acc + b) @ W_next)   (bf16 out), or
#   * last :  H      = dinv * acc + b                         (f32 out).
# ----------------------------------------------------------------------------
def _accumulate(adj_ref, y_ref, acc_ref, *, y_resident, tk):
    k = pl.program_id(1)

    @pl.when(k == 0)
    def _():
        acc_ref[...] = jnp.zeros_like(acc_ref)

    a = adj_ref[...].astype(jnp.bfloat16)
    if y_resident:
        yk = y_ref[pl.ds(pl.multiple_of(k * tk, tk), tk), :]
    else:
        yk = y_ref[...]
    acc_ref[...] += jnp.dot(a, yk, preferred_element_type=jnp.float32)


def _agg_fused_kernel(adj_ref, y_ref, dinv_ref, b_ref, w_ref, o_ref, acc_ref,
                      *, y_resident, tk):
    _accumulate(adj_ref, y_ref, acc_ref, y_resident=y_resident, tk=tk)

    @pl.when(pl.program_id(1) == pl.num_programs(1) - 1)
    def _():
        h = jnp.maximum(dinv_ref[...] * acc_ref[...] + b_ref[...], 0.0)
        y_next = dinv_ref[...] * jnp.dot(h, w_ref[...],
                                         preferred_element_type=jnp.float32)
        o_ref[...] = y_next.astype(o_ref.dtype)


def _agg_last_kernel(adj_ref, y_ref, dinv_ref, b_ref, o_ref, acc_ref,
                     *, y_resident, tk):
    _accumulate(adj_ref, y_ref, acc_ref, y_resident=y_resident, tk=tk)

    @pl.when(pl.program_id(1) == pl.num_programs(1) - 1)
    def _():
        o_ref[...] = (dinv_ref[...] * acc_ref[...] + b_ref[...]).astype(o_ref.dtype)


def _y_spec(n_pad, f_out, tk):
    if n_pad * f_out * 2 <= Y_RESIDENT_MAX_BYTES:
        return True, pl.BlockSpec((n_pad, f_out), lambda i, k: (0, 0))
    return False, pl.BlockSpec((tk, f_out), lambda i, k: (k, 0))


def _agg_compiler_params():
    return pltpu.CompilerParams(
        dimension_semantics=("parallel", "arbitrary"),
        vmem_limit_bytes=VMEM_LIMIT,
    )


def aggregate_fused(adj_q, y, dinv, b, w_next, *, tm, tk):
    n_pad = adj_q.shape[0]
    f_out = y.shape[1]
    f_next = w_next.shape[1]
    y_resident, y_spec = _y_spec(n_pad, f_out, tk)
    y_bytes = n_pad * f_out * 2 if y_resident else (n_pad // tm) * n_pad * f_out * 2
    kernel = functools.partial(_agg_fused_kernel, y_resident=y_resident, tk=tk)
    return pl.pallas_call(
        kernel,
        out_shape=jax.ShapeDtypeStruct((n_pad, f_next), jnp.bfloat16),
        grid_spec=pltpu.PrefetchScalarGridSpec(
            num_scalar_prefetch=0,
            grid=(n_pad // tm, n_pad // tk),
            in_specs=[
                pl.BlockSpec((tm, tk), lambda i, k: (i, k)),        # A (int8)
                y_spec,                                             # Y (bf16)
                pl.BlockSpec((tm, 1), lambda i, k: (i, 0)),         # dinv
                pl.BlockSpec((1, f_out), lambda i, k: (0, 0)),      # bias_l
                pl.BlockSpec((f_out, f_next), lambda i, k: (0, 0)),  # W_{l+1}
            ],
            out_specs=pl.BlockSpec((tm, f_next), lambda i, k: (i, 0)),
            scratch_shapes=[pltpu.VMEM((tm, f_out), jnp.float32)],
        ),
        compiler_params=_agg_compiler_params(),
        cost_estimate=pl.CostEstimate(
            flops=2 * n_pad * n_pad * f_out + 2 * n_pad * f_out * f_next,
            transcendentals=0,
            bytes_accessed=n_pad * n_pad * adj_q.dtype.itemsize + y_bytes
                           + n_pad * f_next * 2 + n_pad * 4
                           + f_out * (f_next + 1) * 4,
        ),
    )(adj_q, y, dinv, b, w_next)


def aggregate_last(adj_q, y, dinv, b, *, tm, tk):
    n_pad = adj_q.shape[0]
    f_out = y.shape[1]
    y_resident, y_spec = _y_spec(n_pad, f_out, tk)
    y_bytes = n_pad * f_out * 2 if y_resident else (n_pad // tm) * n_pad * f_out * 2
    kernel = functools.partial(_agg_last_kernel, y_resident=y_resident, tk=tk)
    return pl.pallas_call(
        kernel,
        out_shape=jax.ShapeDtypeStruct((n_pad, f_out), jnp.float32),
        grid_spec=pltpu.PrefetchScalarGridSpec(
            num_scalar_prefetch=0,
            grid=(n_pad // tm, n_pad // tk),
            in_specs=[
                pl.BlockSpec((tm, tk), lambda i, k: (i, k)),
                y_spec,
                pl.BlockSpec((tm, 1), lambda i, k: (i, 0)),
                pl.BlockSpec((1, f_out), lambda i, k: (0, 0)),
            ],
            out_specs=pl.BlockSpec((tm, f_out), lambda i, k: (i, 0)),
            scratch_shapes=[pltpu.VMEM((tm, f_out), jnp.float32)],
        ),
        compiler_params=_agg_compiler_params(),
        cost_estimate=pl.CostEstimate(
            flops=2 * n_pad * n_pad * f_out,
            transcendentals=0,
            bytes_accessed=n_pad * n_pad * adj_q.dtype.itemsize + y_bytes
                           + n_pad * f_out * 4 + n_pad * 4 + f_out * 4,
        ),
    )(adj_q, y, dinv, b)


# ----------------------------------------------------------------------------
# Parameter init (matching PyG GCNConv: glorot W, zero bias) + full forward
# ----------------------------------------------------------------------------
def init_gcn_params(key, in_channels, hidden_channels, out_channels, num_layers):
    dims = [in_channels] + [hidden_channels] * (num_layers - 1) + [out_channels]
    params = []
    for i in range(num_layers):
        f_in, f_out = dims[i], dims[i + 1]
        key, wk = jax.random.split(key)
        limit = (6.0 / (f_in + f_out)) ** 0.5
        w = jax.random.uniform(wk, (f_in, f_out), jnp.float32, -limit, limit)
        b = jnp.zeros((f_out,), jnp.float32)
        params.append((w, b))
    return params


def _pad_params(params):
    """Zero-pad W/b to lane-aligned shapes (padding stays exactly zero end-to-end)."""
    padded = []
    for w, b in params:
        f_in, f_out = w.shape
        f_in_p, f_out_p = _round_up(f_in, LANE), _round_up(f_out, LANE)
        w_p = jnp.zeros((f_in_p, f_out_p), jnp.float32).at[:f_in, :f_out].set(w)
        b_p = jnp.zeros((1, f_out_p), jnp.float32).at[0, :f_out].set(b)
        padded.append((w_p, b_p))
    return padded


def gcn_forward(x, adj, params, *, adj_store_dtype=jnp.int8):
    n, f_in = x.shape
    out_channels = params[-1][0].shape[1]
    n_pad, tm, tk = _node_tiling(n)

    padded = _pad_params(params)
    f_in_pad = padded[0][0].shape[0]

    # Pad to tile/lane-aligned shapes (exact: zero rows/cols contribute nothing).
    adj_p = jnp.pad(adj, ((0, n_pad - n), (0, n_pad - n)))
    xp = jnp.pad(x, ((0, n_pad - n), (0, f_in_pad - f_in)))

    # Fused prep: quantized A with baked self loops + dinv, single pass over A.
    adj_q, dinv = prep_adjacency(adj_p, n_real=n, tm=tm, tk=tk,
                                 store_dtype=adj_store_dtype)

    # Layer 0 feature transform: Y0 = dinv * (X @ W0)  (bf16).
    y = transform_features(xp, padded[0][0], dinv, tm=tm)

    # Fused aggregation + next-layer transform for all but the last layer.
    num_layers = len(padded)
    for i in range(num_layers - 1):
        y = aggregate_fused(adj_q, y, dinv, padded[i][1], padded[i + 1][0],
                            tm=tm, tk=tk)
        # F.dropout(..., training=False) -> identity (eval mode)

    h = aggregate_last(adj_q, y, dinv, padded[-1][1], tm=tm, tk=tk)
    return h[:n, :out_channels]


def gcn_reference(x, adj, params):
    """Pure-JAX f32 reference."""
    n = adj.shape[0]
    a_hat = adj + jnp.eye(n, dtype=jnp.float32)
    deg = a_hat.sum(axis=1, keepdims=True)
    dinv = jax.lax.rsqrt(deg)
    a_hat = dinv * a_hat * dinv.T
    h = x
    for i, (w, b) in enumerate(params):
        h = a_hat @ (h @ w) + b
        if i < len(params) - 1:
            h = jax.nn.relu(h)
    return h


if __name__ == "__main__":
    N = 128                          # nodes
    IN_CH, HID_CH, OUT_CH = 16, 32, 8
    NUM_LAYERS = 3

    key = jax.random.PRNGKey(0)
    kx, ka, kp = jax.random.split(key, 3)

    x = jax.random.normal(kx, (N, IN_CH), jnp.float32)
    # random symmetric undirected adjacency (no self loops; kernels add them)
    upper = (jax.random.uniform(ka, (N, N)) < 0.05).astype(jnp.float32)
    upper = jnp.triu(upper, k=1)
    adj = upper + upper.T

    params = init_gcn_params(kp, IN_CH, HID_CH, OUT_CH, NUM_LAYERS)

    out = jax.block_until_ready(gcn_forward(x, adj, params))
    ref = jax.block_until_ready(gcn_reference(x, adj, params))

    assert out.shape == (N, OUT_CH)
    assert bool(jnp.all(jnp.isfinite(out)))
    max_err = float(jnp.max(jnp.abs(out - ref)))
    assert bool(jnp.allclose(out, ref, rtol=5e-2, atol=5e-2)), (
        "max abs err = %g" % max_err)
    print("KERNEL_OK")
</pallas_src>

<mosaic_0001>
module attributes {stable_mosaic.version = 11 : i64} {
  func.func @_prep_kernel(%arg0: i32, %arg1: i32, %arg2: memref<64x128xf32, #tpu.memory_space<vmem>>, %arg3: memref<64x128xi8, #tpu.memory_space<vmem>>, %arg4: memref<64x1xf32, #tpu.memory_space<vmem>>, %arg5: memref<64x1xf32, #tpu.memory_space<vmem>>) attributes {dimension_semantics = [#tpu.dimension_semantics<parallel>, #tpu.dimension_semantics<arbitrary>], iteration_bounds = array<i64: 2, 1>, scalar_prefetch = 0 : i64, scratch_operands = 1 : i64, tpu.core_type = #tpu.core_type<tc>, window_params = [{transform_indices = @transform_0, window_bounds = array<i64: 64, 128>}, {transform_indices = @transform_1, window_bounds = array<i64: 64, 128>}, {transform_indices = @transform_2, window_bounds = array<i64: 64, 1>}]} {
    %c0_i32 = arith.constant 0 : i32
    %0 = arith.cmpi eq, %arg1, %c0_i32 : i32
    %1 = arith.extui %0 : i1 to i32
    %c0_i32_0 = arith.constant 0 : i32
    %2 = arith.cmpi ne, %1, %c0_i32_0 : i32
    scf.if %2 {
      %cst_12 = arith.constant 0.000000e+00 : f32
      %28 = vector.broadcast %cst_12 : f32 to vector<64x1xf32>
      %c0_13 = arith.constant 0 : index
      %c0_14 = arith.constant 0 : index
      %29 = vector.load %arg5[%c0_13, %c0_14] : memref<64x1xf32, #tpu.memory_space<vmem>>, vector<64x1xf32>
      tpu.vector_store %arg5[%c0_13, %c0_14], %28 {strides = array<i32>} : memref<64x1xf32, #tpu.memory_space<vmem>>, vector<64x1xf32>,
    } else {
    }
    %c0 = arith.constant 0 : index
    %c0_1 = arith.constant 0 : index
    %3 = vector.load %arg2[%c0, %c0_1] : memref<64x128xf32, #tpu.memory_space<vmem>>, vector<64x128xf32>
    %4 = tpu.iota {dimensions = array<i32: 0>} : vector<64x128xi32>
    %c64_i32 = arith.constant 64 : i32
    %5 = arith.muli %arg0, %c64_i32 : i32
    %6 = vector.broadcast %5 : i32 to vector<64x128xi32>
    %7 = arith.addi %4, %6 : vector<64x128xi32>
    %8 = tpu.iota {dimensions = array<i32: 1>} : vector<64x128xi32>
    %c128_i32 = arith.constant 128 : i32
    %9 = arith.muli %arg1, %c128_i32 : i32
    %10 = vector.broadcast %9 : i32 to vector<64x128xi32>
    %11 = arith.addi %8, %10 : vector<64x128xi32>
    %12 = arith.cmpi eq, %7, %11 : vector<64x128xi32>
    %c128_i32_2 = arith.constant 128 : i32
    %13 = vector.broadcast %c128_i32_2 : i32 to vector<64x128xi32>
    %14 = arith.cmpi slt, %7, %13 : vector<64x128xi32>
    %15 = arith.andi %12, %14 : vector<64x128xi1>
    %cst = arith.constant 1.000000e+00 : f32
    %16 = vector.broadcast %cst : f32 to vector<64x128xf32>
    %17 = arith.select %15, %16, %3 : vector<64x128xi1>, vector<64x128xf32>
    %c0_3 = arith.constant 0 : index
    %c0_4 = arith.constant 0 : index
    %18 = vector.load %arg5[%c0_3, %c0_4] : memref<64x1xf32, #tpu.memory_space<vmem>>, vector<64x1xf32>
    %cst_5 = arith.constant dense<0.000000e+00> : vector<64xf32>
    %19 = vector.multi_reduction <add>, %17, %cst_5 [1] : vector<64x128xf32> to vector<64xf32>
    %20 = vector.shape_cast %19 : vector<64xf32> to vector<64x1xf32>
    %21 = arith.addf %18, %20 : vector<64x1xf32>
    %c0_6 = arith.constant 0 : index
    %c0_7 = arith.constant 0 : index
    %22 = vector.load %arg5[%c0_6, %c0_7] : memref<64x1xf32, #tpu.memory_space<vmem>>, vector<64x1xf32>
    tpu.vector_store %arg5[%c0_6, %c0_7], %21 {strides = array<i32>} : memref<64x1xf32, #tpu.memory_space<vmem>>, vector<64x1xf32>,
    %23 = arith.fptosi %17 : vector<64x128xf32> to vector<64x128xi8>
    %c0_8 = arith.constant 0 : index
    %c0_9 = arith.constant 0 : index
    %24 = vector.load %arg3[%c0_8, %c0_9] : memref<64x128xi8, #tpu.memory_space<vmem>>, vector<64x128xi8>
    tpu.vector_store %arg3[%c0_8, %c0_9], %23 {strides = array<i32>} : memref<64x128xi8, #tpu.memory_space<vmem>>, vector<64x128xi8>,
    %c0_i32_10 = arith.constant 0 : i32
    %25 = arith.cmpi eq, %arg1, %c0_i32_10 : i32
    %26 = arith.extui %25 : i1 to i32
    %c0_i32_11 = arith.constant 0 : i32
    %27 = arith.cmpi ne, %26, %c0_i32_11 : i32
    scf.if %27 {
      %c0_12 = arith.constant 0 : index
      %c0_13 = arith.constant 0 : index
      %28 = vector.load %arg5[%c0_12, %c0_13] : memref<64x1xf32, #tpu.memory_space<vmem>>, vector<64x1xf32>
      %cst_14 = arith.constant 1.000000e+00 : f32
      %29 = vector.broadcast %cst_14 : f32 to vector<64x1xf32>
      %30 = arith.maximumf %28, %29 : vector<64x1xf32>
      %31 = math.rsqrt %30 : vector<64x1xf32>
      %c0_15 = arith.constant 0 : index
      %c0_16 = arith.constant 0 : index
      %32 = vector.load %arg4[%c0_15, %c0_16] : memref<64x1xf32, #tpu.memory_space<vmem>>, vector<64x1xf32>
      tpu.vector_store %arg4[%c0_15, %c0_16], %31 {strides = array<i32>} : memref<64x1xf32, #tpu.memory_space<vmem>>, vector<64x1xf32>,
    } else {
    }
    return
  }
  func.func @transform_0(%arg0: i32, %arg1: i32) -> (i32, i32) {
    %c0_i32 = arith.constant 0 : i32
    return %arg0, %arg1 : i32, i32
  }
  func.func @transform_1(%arg0: i32, %arg1: i32) -> (i32, i32) {
    %c0_i32 = arith.constant 0 : i32
    return %arg0, %arg1 : i32, i32
  }
  func.func @transform_2(%arg0: i32, %arg1: i32) -> (i32, i32) {
    %c0_i32 = arith.constant 0 : i32
    %c0_i32_0 = arith.constant 0 : i32
    return %arg0, %c0_i32 : i32, i32
  }
}

</mosaic_0001>

<bundles_post_ra>
// kernel: tpu_custom_call.1
= control target key start
LH: loop header
LB: loop body
LE: loop exit
PB: predicated region body
PF: predicated region fallthrough
CT: control target
= control target key end

     0   :  { %8 = vsyncpa [#allocation4], 0  ;;  %s986_s0 = inlined_call_operand.hbm [shape: f32[128,128], index: 0, kind: input, shape index: {}]   ;;  %s987_s1 = inlined_call_operand.hbm [shape: s8[128,128], index: 1, kind: output, shape index: {0}]   ;;  %s988_s2 = inlined_call_operand.vmem [shape: f32[128,1], index: 2, kind: output, shape index: {1}]  }
   0x1   :  { %10 = vsyncpa [#allocation4 + $0x1], 0 }
   0x2   :  { %11 = vsyncpa [#allocation5], 0 }
   0x3   :  { %13 = vsyncpa [#allocation5 + $0x1], 0  ;;  %s751_s9 = smov 0   ;;  %s753_s10 = smov 0  }
   0x4   :  { %s755_s11 = smov 0   ;;  %s757_s12 = smov 0  }
   0x5   :  { %s759_s13 = smov 0   ;;  %s761_s14 = smov 0  }
   0x6 LB: > { %s512_s15 = sadd.s32 4294967295, %s727_s14   ;;  %s513_s16 = sadd.s32 4294967294, %s727_s14   ;;  %s727_s14 = sphi %s761_s14, %s19_s14   ;;  %s723_s13 = sphi %s759_s13, %s1004_s13   ;;  %s719_s12 = sphi %s757_s12, %s1003_s12   ;;  %s715_s11 = sphi %s755_s11, %s1002_s11   ;;  %s711_s10 = sphi %s753_s10, %s1001_s10   ;;  %s707_s9 = sphi %s751_s9, %s1000_s9  }
   0x7   : > { %s31_s17 = sadd.s32 1, %s723_s13  ;;  %s40_s18 = sadd.s32 1, %s715_s11 }
   0x8   : > { %p33_p0 = scmp.ge.s32.totalorder %s31_s17, 2  ;;  %p47_p1 = scmp.ne.s32.totalorder %s715_s11, %s711_s10 }
   0x9   : > { %p48_p2 = scmp.eq.s32.totalorder %s727_s14, 0  ;;  %p53_p3 = scmp.ne.s32.totalorder %s711_s10, %s707_s9 }
   0xa   : > { %s1006_s17 = smov (%p33_p0, %s31_s17), 0  ;;  %p54_p5 = scmp.eq.s32.totalorder %s512_s15, 0 }
   0xb   : > { %p792_p4 = por %p48_p2, %p47_p1  ;;  %s35_s20 = ssub.s32 %s723_s13, %s1006_s17 }
   0xc   : > { %p79_p6 = scmp.eq.s32.totalorder %s512_s15, 1  ;;  %p38_p7 = scmp.eq.s32.totalorder %s35_s20, 0 }
   0xd   : > { %p798_p8 = por %p54_p5, %p53_p3  ;;  %p85_p10 = scmp.eq.s32.totalorder %s513_s16, 1 }
   0xe   : > { %p802_p9 = por %p79_p6, %p47_p1  ;;  %p544_p13 = scmp.lt.s32.totalorder %s727_s14, 2 }
   0xf   : > { %s807_s23 = scalar_select %p38_p7, %s715_s11, %s40_s18  }
  0x10   : > { %s992_s22 = scalar_select %p802_p9, 1, 0 }
  0x11   : > { %p809_p11 = por %p85_p10, %p53_p3  ;;  %s131_s25 = sand.u32 1, %s715_s11  }
  0x12   : > { %s516_s26 = sshll.u32 %s131_s25, 6  ;;  %s530_s27 = sshll.u32 %s723_s13, 10 }
  0x13   : > { %s993_s24 = scalar_select %p809_p11, 1, 0 }
  0x14   : > { %s820_s30 = scalar_lea.hbm %s986_s0, %s530_s27  ;;  %s135_s3 = scalar_lea.vmem [#allocation3], %s516_s26 }
  0x15   : > { %s143_s4 = sshll.u32 %s135_s3, 4  ;;  %p826_p0 = pnand %p544_p13, %p792_p4  ;;  %s822_s4 = int_to_ptr.vmem [resolvable:$true] %s143_s4 }
  0x16   : > { %s831_s6 = scalar_lea.sflag [#allocation4], %s131_s25  ;;  %s615_s7 = scalar_lea.hbm %s820_s30, 1024 }
  0x17   : > { %p616_p2 = scmp.ne.s32.totalorder %s820_s30, %s615_s7  ;;  %p617_p3 = pneg %p826_p0 }
  0x18   : > { %s620_s16 = scalar_lea.hbm %s986_s0, 2048  ;;  %p621_p4 = scmp.lt.u32.totalorder %s820_s30, %s986_s0 }
  0x19   : > { %p618_p5 = pnand %p617_p3, %p616_p2  ;;  %p622_p7 = scmp.lt.u32.totalorder %s620_s16, %s615_s7 }
  0x1a   : > { %p624_p13 = scmp.lt.u32.totalorder %s615_s7, %s820_s30 }
  0x1b   : > { %p619_p6 = pneg %p618_p5  ;;  %p623_p10 = por %p622_p7, %p621_p4 }
  0x1d   : > { %p625_p12 = por %p624_p13, %p623_p10 }
  0x1f   : > { %p626_p1 = pnand %p625_p12, %p619_p6 }
  0x21   : > { %629 = shalt.err (!%p626_p1)
}
  0x22   : > { %s630_s20 = scalar_lea.vmem %s822_s4, 1024  ;;  %s729_s25 = smov [#allocation3]  }
  0x23   : > { %p631_p2 = scmp.ne.s32.totalorder %s822_s4, %s630_s20  ;;  %s635_s26 = sshll.u32 %s729_s25, 4  ;;  %s636_s26 = int_to_ptr.vmem [resolvable:$false] %s635_s26 }
  0x24   : > { %s637_s27 = scalar_lea.vmem %s636_s26, 2048  ;;  %p638_p9 = scmp.lt.s32.totalorder %s822_s4, %s636_s26 }
  0x25   : > { %p633_p5 = pnand %p631_p2, %p617_p3  ;;  %p639_p4 = scmp.lt.s32.totalorder %s637_s27, %s630_s20 }
  0x27   : > { %p634_p11 = pneg %p633_p5  ;;  %p640_p7 = por %p639_p4, %p638_p9 }
  0x29   : > { %p641_p10 = pnand %p640_p7, %p634_p11 }
  0x2b   : > { %644 = shalt.err (!%p641_p10)
}
  0x2c   : > { %s730_s28 = smov 128   ;;  %s731_s29 = smov 8  }
  0x2d   : > { %539 = dma.hbm_to_vmem [thread:$0]  (!%p826_p0), %s820_s30, 1024, %s822_s4, %s831_s6, %s730_s28, %s730_s28, %s731_s29  }
  0x2e   : > { %p151_p12 = scmp.lt.s32.totalorder %s727_s14, 3  ;;  %p995_p1 = scmp.ge.s32.totalorder %s727_s14, 1 }
  0x30   : > { %p152_p3 = pnand %p995_p1, %p151_p12 }
  0x31   : > { %s863_s3 = sand.u32 (!%p152_p3), 1, %s711_s10  }
  0x32   : > { %155 = sbr.rel (%p152_p3) target bundleno = 247 (0xf7), region = 24  ;;  %s520_s7 = sshll.u32 (!%p152_p3), %s863_s3, 6 }
  0x33   : > { %s158_s8 = scalar_lea.sflag (!%p152_p3), [#allocation4], %s863_s3  ;;  %s867_s15 = scalar_lea.vmem (!%p152_p3), [#allocation3], %s520_s7 }
  0x39   : > { %698 = dma.done.wait (%p798_p8), %s158_s8, 1024  }
  0x3a   : > { %700 = vsyncadd (%p798_p8), %s158_s8, 4294966272  ;;  %v216_v0 = vlaneseq  ;;  %s524_s30 = sshll.u32 %s719_s12, 6  ;;  %vm199_vm0 = vcmask 7168   ;;  %v732_v2 = vmov 0.0   ;;  %v210_v15 = vld [vmem:[%s867_s15 + $0x10] sm:$0xff]  ;;  %v208_v16 = vld [vmem:[%s867_s15] sm:$0xff] }
  0x3b   : > { %v226_v1 = vstv %s524_s30  ;;  %202 = vst.msk [vmem:[#allocation2 + $0x10] sm:$0xff] %vm199_vm0, %v732_v2  ;;  %200 = vst.msk [vmem:[#allocation2] sm:$0xff] %vm199_vm0, %v732_v2  ;;  %v211_v22 = vld [vmem:[%s867_s15 + $0x18] sm:$0xff]  ;;  %v209_v24 = vld [vmem:[%s867_s15 + $0x8] sm:$0xff]  ;;  %s521_s21 = sshll.u32 %s863_s3, 4  ;;  %s531_s6 = sshll.u32 %s719_s12, 8 }
  0x3c   : > { %201 = vst.msk [vmem:[#allocation2 + $0x8] sm:$0xff] %vm199_vm0, %v732_v2  ;;  %203 = vst.msk [vmem:[#allocation2 + $0x18] sm:$0xff] %vm199_vm0, %v732_v2  ;;  %v217_v3 = vshrl.u32 %v216_v0, 7  ;;  %v882_v4 = vand.u32 127, %v216_v0  ;;  %v213_v26 = vld [vmem:[%s867_s15 + $0x28] sm:$0xff]  ;;  %v212_v29 = vld [vmem:[%s867_s15 + $0x20] sm:$0xff]  ;;  %s911_s19 = scalar_lea.hbm %s987_s1, %s531_s6 }
  0x3d   : > { %204 = vst.msk [vmem:[#allocation2 + $0x20] sm:$0xff] %vm199_vm0, %v732_v2  ;;  %205 = vst.msk [vmem:[#allocation2 + $0x28] sm:$0xff] %vm199_vm0, %v732_v2  ;;  %v215_v32 = vld [vmem:[%s867_s15 + $0x38] sm:$0xff]  ;;  %v214_v39 = vld [vmem:[%s867_s15 + $0x30] sm:$0xff]  ;;  %s179_s4 = scalar_lea.vmem [#allocation6], %s521_s21  ;;  %s379_s20 = scalar_lea.sflag [#allocation5], %s863_s3 }
  0x3e   : > { %206 = vst.msk [vmem:[#allocation2 + $0x30] sm:$0xff] %vm199_vm0, %v732_v2  ;;  %207 = vst.msk [vmem:[#allocation2 + $0x38] sm:$0xff] %vm199_vm0, %v732_v2  ;;  %v219_v5 = vadd.s32 16, %v217_v3  ;;  %v227_v6 = vadd.s32 %v226_v1, %v217_v3  ;;  %v220_v7 = vadd.s32 24, %v217_v3  ;;  %v218_v8 = vadd.s32 8, %v217_v3  ;;  %s398_s5 = sshll.u32 %s179_s4, 4  ;;  %s905_s5 = int_to_ptr.vmem [resolvable:$true] %s398_s5 }
  0x3f   : > { %v222_v9 = vadd.s32 40, %v217_v3  ;;  %v221_v10 = vadd.s32 32, %v217_v3  ;;  %v224_v11 = vadd.s32 56, %v217_v3  ;;  %v223_v12 = vadd.s32 48, %v217_v3  ;;  %s645_s25 = scalar_lea.vmem %s905_s5, 256  ;;  %p996_p9 = scmp.ne.s32.totalorder %s992_s22, 0 }
  0x40   : > { %v229_v13 = vadd.s32 %v226_v1, %v219_v5  ;;  %vm240_vm1 = vcmp.eq.s32.totalorder %v227_v6, %v882_v4  ;;  %vm248_vm2 = vcmp.lt.s32.totalorder %v227_v6, 128  ;;  %v230_v14 = vadd.s32 %v226_v1, %v220_v7  ;;  %p646_p8 = scmp.ne.s32.totalorder %s905_s5, %s645_s25  ;;  %s733_s26 = smov [#allocation6]  }
  0x41   : > { %vm256_vm3 = vmand %vm240_vm1, %vm248_vm2  ;;  %v228_v17 = vadd.s32 %v226_v1, %v218_v8  ;;  %v232_v18 = vadd.s32 %v226_v1, %v222_v9  ;;  %v231_v19 = vadd.s32 %v226_v1, %v221_v10  ;;  %v234_v20 = vadd.s32 %v226_v1, %v224_v11  ;;  %s649_s27 = sshll.u32 %s733_s26, 4  ;;  %s650_s27 = int_to_ptr.vmem [resolvable:$false] %s649_s27 }
  0x42   : > { %vm242_vm4 = vcmp.eq.s32.totalorder %v229_v13, %v882_v4  ;;  %vm250_vm5 = vcmp.lt.s32.totalorder %v229_v13, 128  ;;  %v264_v21 = vsel %vm256_vm3, 1.0, %v208_v16  ;;  %vm243_vm6 = vcmp.eq.s32.totalorder %v230_v14, %v882_v4  ;;  %p647_p11 = pnand %p646_p8, %p996_p9  ;;  %s651_s28 = scalar_lea.vmem %s650_s27, 512 }
  0x43   : > { %vm258_vm7 = vmand %vm242_vm4, %vm250_vm5  ;;  %280 = vadd.xlane.f32.xlu0 %v264_v21  ;;  %v313_v23 = vtrunc.f32 %v264_v21  ;;  %vm251_vm8 = vcmp.lt.s32.totalorder %v230_v14, 128  ;;  %vm241_vm9 = vcmp.eq.s32.totalorder %v228_v17, %v882_v4  ;;  %vm249_vm10 = vcmp.lt.s32.totalorder %v228_v17, 128  ;;  %p652_p6 = scmp.lt.s32.totalorder %s905_s5, %s650_s27  ;;  %p653_p13 = scmp.lt.s32.totalorder %s651_s28, %s645_s25 }
  0x44   : > { %v266_v25 = vsel %vm258_vm7, 1.0, %v210_v15  ;;  %vm259_vm11 = vmand %vm243_vm6, %vm251_vm8  ;;  %vm245_vm12 = vcmp.eq.s32.totalorder %v232_v18, %v882_v4  ;;  %vm253_vm13 = vcmp.lt.s32.totalorder %v232_v18, 128  ;;  %vm244_vm14 = vcmp.eq.s32.totalorder %v231_v19, %v882_v4  ;;  %p648_p0 = pneg %p647_p11 }
  0x45   : > { %284 = vadd.xlane.f32.xlu1 %v266_v25  ;;  %v315_v27 = vtrunc.f32 %v266_v25  ;;  %v267_v28 = vsel %vm259_vm11, 1.0, %v211_v22  ;;  %vm257_vm15 = vmand %vm241_vm9, %vm249_vm10  ;;  %vm252_vm1 = vcmp.lt.s32.totalorder %v231_v19, 128  ;;  %vm247_vm2 = vcmp.eq.s32.totalorder %v234_v20, %v882_v4  ;;  %p654_p2 = por %p653_p13, %p652_p6 }
  0x46   : > { %v316_v30 = vtrunc.f32 %v267_v28  ;;  %v265_v31 = vsel %vm257_vm15, 1.0, %v209_v24  ;;  %vm261_vm3 = vmand %vm245_vm12, %vm253_vm13  ;;  %vm255_vm4 = vcmp.lt.s32.totalorder %v234_v20, 128  ;;  %v233_v33 = vadd.s32 %v226_v1, %v223_v12 }
  0x47   : > { %v314_v34 = vtrunc.f32 %v265_v31  ;;  %282 = vadd.xlane.f32.xlu0 %v265_v31  ;;  %v269_v35 = vsel %vm261_vm3, 1.0, %v213_v26  ;;  %vm260_vm5 = vmand %vm244_vm14, %vm252_vm1  ;;  %p655_p5 = pnand %p654_p2, %p648_p0 }
  0x48   : > { %v325_v36 = vpack.c.f32.eXmY %v315_v27, %v316_v30, 312  ;;  %v318_v37 = vtrunc.f32 %v269_v35  ;;  %v268_v38 = vsel %vm260_vm5, 1.0, %v212_v29  ;;  %vm263_vm6 = vmand %vm247_vm2, %vm255_vm4  ;;  %vm246_vm7 = vcmp.eq.s32.totalorder %v233_v33, %v882_v4 }
  0x49   : > { %286 = vadd.xlane.f32.xlu1 %v267_v28  ;;  %v321_v40 = vpack.c.f32.eXmY %v313_v23, %v314_v34, 312  ;;  %v317_v41 = vtrunc.f32 %v268_v38  ;;  %v271_v42 = vsel %vm263_vm6, 1.0, %v215_v32  ;;  %vm254_vm8 = vcmp.lt.s32.totalorder %v233_v33, 128 }
  0x4a   : > { %v320_v43 = vtrunc.f32 %v271_v42  ;;  %vm262_vm9 = vmand %vm246_vm7, %vm254_vm8 }
  0x4b   : > { %v329_v44 = vpack.c.b8 %v325_v36, %v321_v40  ;;  %288 = vadd.xlane.f32.xlu0 %v268_v38  ;;  %v270_v45 = vsel %vm262_vm9, 1.0, %v214_v39  ;;  %v331_v46 = vpack.c.f32.eXmY %v317_v41, %v318_v37, 312 }
  0x4c   : > { %v319_v47 = vtrunc.f32 %v270_v45 }
  0x4d   : > { %341 = vst [vmem:[%s179_s4] sm:$0xff] %v329_v44  ;;  %290 = vadd.xlane.f32.xlu1 %v269_v35 }
  0x4e   : > { %v335_v48 = vpack.c.f32.eXmY %v319_v47, %v320_v43, 312 }
  0x4f   : > { %292 = vadd.xlane.f32.xlu0 %v270_v45 }
  0x50   : > { %v339_v49 = vpack.c.b8 %v335_v48, %v331_v46 }
  0x51   : > { %294 = vadd.xlane.f32.xlu1 %v271_v42 }
  0x52   : > { %342 = vst [vmem:[%s179_s4 + $0x8] sm:$0xff] %v339_v49 }
  0x53   : > { %658 = shalt.err (!%p655_p5)
}
  0x54   : > { %s659_s29 = scalar_lea.hbm %s911_s19, 256  ;;  %s663_s15 = scalar_lea.hbm %s987_s1, 512 }
  0x55   : > { %p660_p4 = scmp.ne.s32.totalorder %s911_s19, %s659_s29  ;;  %p664_p12 = scmp.lt.u32.totalorder %s911_s19, %s987_s1 }
  0x56   : > { %p665_p1 = scmp.lt.u32.totalorder %s663_s15, %s659_s29  ;;  %p667_p8 = scmp.lt.u32.totalorder %s659_s29, %s911_s19 }
  0x57   : > { %p661_p7 = pnand %p660_p4, %p996_p9 }
  0x58   : > { %p666_p3 = por %p665_p1, %p664_p12 }
  0x59   : > { %p662_p10 = pneg %p661_p7 }
  0x5a   : > { %p668_p11 = por %p667_p8, %p666_p3 }
  0x5c   : > { %p669_p0 = pnand %p668_p11, %p662_p10 }
  0x5e   : > { %672 = shalt.err (!%p669_p0)
}
  0x5f   : > { %s734_s4 = smov 128   ;;  %s735_s6 = smov 8   ;;  %v272_v50 = vld [vmem:[#allocation2] sm:$0xff]  ;;  %v274_v51 = vld [vmem:[#allocation2 + $0x10] sm:$0xff]  ;;  %v273_v55 = vld [vmem:[#allocation2 + $0x8] sm:$0xff] }
  0x60   : > { %534 = dma.vmem_to_hbm [thread:$0]  (%p996_p9), %s905_s5, 256, %s911_s19, %s379_s20, %s734_s4, %s734_s4, %s735_s6   ;;  %v275_v57 = vld [vmem:[#allocation2 + $0x18] sm:$0xff]  ;;  %v276_v61 = vld [vmem:[#allocation2 + $0x20] sm:$0xff]  ;;  %v277_v63 = vld [vmem:[#allocation2 + $0x28] sm:$0xff] }
  0x61   : > { %s522_s22 = sshll.u32 %s719_s12, 3  ;;  %v278_v4 = vld [vmem:[#allocation2 + $0x30] sm:$0xff]  ;;  %v279_v8 = vld [vmem:[#allocation2 + $0x38] sm:$0xff] }
  0x62   : > { %p942_p9 = scmp.lt.s32.totalorder %s522_s22, 15 }
  0x64   : > { %s1008_s22 = smov (!%p942_p9, %s522_s22), 15 }
  0x65   : > { %s523_s12 = sshll.u32 %s1008_s22, 3 }
  0x66   : > { %s193_s18 = scalar_lea.vmem %s988_s2, %s523_s12 }
  0xd0   : > { %v281_v52 = vpop.xlane.xlu0 %280 }
  0xd1   : > { %v296_v53 = vadd.f32 %v281_v52, %v272_v50 }
  0xd2   : > { %v285_v54 = vpop.xlane.xlu1 %284 }
  0xd3   : > { %v298_v56 = vadd.f32 %v285_v54, %v274_v51  ;;  %305 = vst.msk [vmem:[#allocation2] sm:$0xff] %vm199_vm0, %v296_v53 }
  0xd4   : > { %v283_v58 = vpop.xlane.xlu0 %282 }
  0xd5   : > { %307 = vst.msk [vmem:[#allocation2 + $0x10] sm:$0xff] %vm199_vm0, %v298_v56  ;;  %v297_v59 = vadd.f32 %v283_v58, %v273_v55 }
  0xd6   : > { %v287_v60 = vpop.xlane.xlu1 %286 }
  0xd7   : > { %v299_v62 = vadd.f32 %v287_v60, %v275_v57  ;;  %306 = vst.msk [vmem:[#allocation2 + $0x8] sm:$0xff] %vm199_vm0, %v297_v59 }
  0xd8   : > { %v289_v0 = vpop.xlane.xlu0 %288 }
  0xd9   : > { %308 = vst.msk [vmem:[#allocation2 + $0x18] sm:$0xff] %vm199_vm0, %v299_v62  ;;  %v300_v1 = vadd.f32 %v289_v0, %v276_v61 }
  0xda   : > { %v346_v2 = vld [vmem:[#allocation2] sm:$0xff]  ;;  %v291_v3 = vpop.xlane.xlu1 %290 }
  0xdb   : > { %v354_v5 = vmax.f32 %v346_v2, 1.0  ;;  %v301_v6 = vadd.f32 %v291_v3, %v277_v63  ;;  %309 = vst.msk [vmem:[#allocation2 + $0x20] sm:$0xff] %vm199_vm0, %v300_v1 }
  0xdc   : > { %v348_v7 = vld [vmem:[#allocation2 + $0x10] sm:$0xff]  ;;  %v293_v9 = vpop.xlane.xlu0 %292 }
  0xdd   : > { %v356_v10 = vmax.f32 %v348_v7, 1.0  ;;  %599 = vrsqrt.f32 %v354_v5  ;;  %310 = vst.msk [vmem:[#allocation2 + $0x28] sm:$0xff] %vm199_vm0, %v301_v6  ;;  %v302_v11 = vadd.f32 %v293_v9, %v278_v4 }
  0xde   : > { %v347_v12 = vld [vmem:[#allocation2 + $0x8] sm:$0xff]  ;;  %v295_v13 = vpop.xlane.xlu1 %294 }
  0xdf   : > { %601 = vrsqrt.f32 %v356_v10  ;;  %v355_v14 = vmax.f32 %v347_v12, 1.0  ;;  %v303_v15 = vadd.f32 %v295_v13, %v279_v8  ;;  %311 = vst.msk [vmem:[#allocation2 + $0x30] sm:$0xff] %vm199_vm0, %v302_v11 }
  0xe0   : > { %v349_v16 = vld [vmem:[#allocation2 + $0x18] sm:$0xff] }
  0xe1   : > { %v357_v17 = vmax.f32 %v349_v16, 1.0  ;;  %603 = vrsqrt.f32 %v355_v14  ;;  %312 = vst.msk [vmem:[#allocation2 + $0x38] sm:$0xff] %vm199_vm0, %v303_v15 }
  0xe2   : > { %v350_v18 = vld [vmem:[#allocation2 + $0x20] sm:$0xff] }
  0xe3   : > { %605 = vrsqrt.f32 %v357_v17  ;;  %v358_v19 = vmax.f32 %v350_v18, 1.0 }
  0xe4   : > { %v351_v20 = vld [vmem:[#allocation2 + $0x28] sm:$0xff] }
  0xe5   : > { %v359_v21 = vmax.f32 %v351_v20, 1.0  ;;  %607 = vrsqrt.f32 %v358_v19 }
  0xe6   : > { %v352_v22 = vld [vmem:[#allocation2 + $0x30] sm:$0xff] }
  0xe7   : > { %v600_v23 = vpop.eup %599  ;;  %609 = vrsqrt.f32 %v359_v21  ;;  %v360_v24 = vmax.f32 %v352_v22, 1.0 }
  0xe8   : > { %370 = vst.msk [vmem:[%s193_s18] sm:$0xff] %vm199_vm0, %v600_v23  ;;  %v353_v25 = vld [vmem:[#allocation2 + $0x38] sm:$0xff] }
  0xe9   : > { %v602_v26 = vpop.eup %601  ;;  %v361_v27 = vmax.f32 %v353_v25, 1.0  ;;  %611 = vrsqrt.f32 %v360_v24 }
  0xea   : > { %372 = vst.msk [vmem:[%s193_s18 + $0x10] sm:$0xff] %vm199_vm0, %v602_v26 }
  0xeb   : > { %v604_v28 = vpop.eup %603  ;;  %613 = vrsqrt.f32 %v361_v27 }
  0xec   : > { %371 = vst.msk [vmem:[%s193_s18 + $0x8] sm:$0xff] %vm199_vm0, %v604_v28 }
  0xed   : > { %v606_v29 = vpop.eup %605 }
  0xee   : > { %373 = vst.msk [vmem:[%s193_s18 + $0x18] sm:$0xff] %vm199_vm0, %v606_v29 }
  0xef   : > { %v608_v30 = vpop.eup %607 }
  0xf0   : > { %374 = vst.msk [vmem:[%s193_s18 + $0x20] sm:$0xff] %vm199_vm0, %v608_v30 }
  0xf1   : > { %v610_v31 = vpop.eup %609 }
  0xf2   : > { %375 = vst.msk [vmem:[%s193_s18 + $0x28] sm:$0xff] %vm199_vm0, %v610_v31 }
  0xf3   : > { %v612_v32 = vpop.eup %611 }
  0xf4   : > { %376 = vst.msk [vmem:[%s193_s18 + $0x30] sm:$0xff] %vm199_vm0, %v612_v32 }
  0xf5   : > { %v614_v33 = vpop.eup %613 }
  0xf6   : > { %377 = vst.msk [vmem:[%s193_s18 + $0x38] sm:$0xff] %vm199_vm0, %v614_v33 }
  0xf7 PF: > { %s417_s19 = sand.u32 1, %s707_s9   ;;  %p998_p6 = scmp.ne.s32.totalorder %s993_s24, 0 }
  0xf8   : > { %p999_p13 = scmp.ge.s32.totalorder %s727_s14, 2  ;;  %s418_s20 = scalar_lea.sflag [#allocation5], %s417_s19 }
  0xfa   : > { %p541_p2 = pnand %p999_p13, %p998_p6 }
  0xfc   : > { %702 = dma.done.wait (!%p541_p2), %s418_s20, 256  }
  0xfd   : > { %704 = vsyncadd (!%p541_p2), %s418_s20, 4294967040  ;;  %s19_s14 = sadd.s32 1, %s727_s14   ;;  %s1000_s9 = smov %s711_s10 }
  0xfe   : > { %p16_p5 = scmp.ge.s32.totalorder %s19_s14, 4   ;;  %s1001_s10 = smov %s715_s11 }
  0xff   : > { %s1002_s11 = smov %s807_s23  ;;  %s1003_s12 = smov %s723_s13 }
 0x100   : > { %s1004_s13 = smov %s1006_s17  ;;  %18 = sbr.rel (!%p16_p5) target bundleno = 6 (0x6), region = 89 }
 0x107   :  { %431 = vsyncpa [#allocation4], 1 }
 0x108   :  { %433 = vsyncpa [#allocation4 + $0x1], 1 }
 0x109   :  { %434 = vsyncpa [#allocation5], 1 }
 0x10a   :  { %436 = vsyncpa [#allocation5 + $0x1], 1 }

</bundles_post_ra>
